<compile_context>
chip_gen: v5e
topology: v5e:2x2
jax: 0.10.0
libtpu: 0.0.40
codegen_flags: <defaults>
</compile_context>

<pallas_src>
import math

import jax
import jax.numpy as jnp
from jax.experimental import pallas as pl
from jax.experimental.pallas import tpu as pltpu


def _round_up(x, m):
    return ((x + m - 1) // m) * m


def qnet_kernel(x_ref, w1_ref, b1_ref, w2_ref, b2_ref, w3_ref, b3_ref, o_ref):
    # In-kernel f32 -> bf16 cast (VPU has slack; saves a separate XLA pass).
    x = x_ref[...].astype(jnp.bfloat16)
    # fc1 + ReLU (bf16 matmul, f32 accumulate)
    h = jnp.dot(x, w1_ref[...], preferred_element_type=jnp.float32)
    h = jnp.maximum(h + b1_ref[...], 0.0)
    # fc2 + ReLU
    h = jnp.dot(h.astype(w2_ref.dtype), w2_ref[...],
                preferred_element_type=jnp.float32)
    h = jnp.maximum(h + b2_ref[...], 0.0)
    # fc3 (no activation); output is unpadded -> minimal HBM writeback
    out = jnp.dot(h.astype(w3_ref.dtype), w3_ref[...],
                  preferred_element_type=jnp.float32)
    o_ref[...] = (out + b3_ref[...]).astype(o_ref.dtype)


def _pick_row_tile(B):
    # Small batch: single grid step, 16-row aligned (bf16 sublane packing).
    if B <= 256:
        return _round_up(max(B, 1), 16)
    # Large batch: big tiles to amortize per-step overhead (mem-bound kernel),
    # but always >= 2 grid steps so both v7x TensorCores get sharded work.
    TM_MAX = 1024
    half = _round_up((B + 1) // 2, 256)
    return min(TM_MAX, half)


def qnetwork_forward(x, params):
    """x: [B, state_dim] float32. params: w1,w2,w3 bf16; b1,b2,b3 f32 of shape (1, n)."""
    w1, b1, w2, b2, w3, b3 = (params[k] for k in ("w1", "b1", "w2", "b2", "w3", "b3"))
    B, state_dim = x.shape
    hidden_dim = w1.shape[1]
    action_dim = w3.shape[1]

    tm = _pick_row_tile(B)
    grid = (pl.cdiv(B, tm),)

    const = lambda a: pl.BlockSpec(a.shape, lambda i: (0,) * a.ndim)

    flops = 2 * B * (state_dim * hidden_dim + hidden_dim * hidden_dim
                     + hidden_dim * action_dim)
    bytes_accessed = (x.size * 4                                  # f32 input (cast in-kernel)
                      + (w1.size + w2.size + w3.size) * 2         # bf16 weights
                      + (b1.size + b2.size + b3.size) * 4         # f32 biases
                      + B * action_dim * 4)                       # unpadded f32 output

    out = pl.pallas_call(
        qnet_kernel,
        out_shape=jax.ShapeDtypeStruct((B, action_dim), jnp.float32),
        grid=grid,
        in_specs=[
            pl.BlockSpec((tm, state_dim), lambda i: (i, 0)),  # x: tiled over batch rows
            const(w1), const(b1),                             # weights/biases: VMEM-resident
            const(w2), const(b2),
            const(w3), const(b3),
        ],
        out_specs=pl.BlockSpec((tm, action_dim), lambda i: (i, 0)),
        compiler_params=pltpu.CompilerParams(
            dimension_semantics=("parallel",),   # shards batch across TCs on v7x
            vmem_limit_bytes=32 << 20,           # safe for tm<=1024 on v5e/v6e/v7x
        ),
        cost_estimate=pl.CostEstimate(
            flops=flops, transcendentals=0, bytes_accessed=bytes_accessed),
    )(x, w1, b1, w2, b2, w3, b3)

    return out


def init_params(key, state_dim, action_dim, hidden_dim=128):
    """Mimics nn.Linear's U(-1/sqrt(fan_in), 1/sqrt(fan_in)); weights stored bf16."""

    def linear(key, fan_in, fan_out):
        kw, kb = jax.random.split(key)
        bound = 1.0 / math.sqrt(fan_in)
        w = jax.random.uniform(kw, (fan_in, fan_out), jnp.float32, -bound, bound)
        b = jax.random.uniform(kb, (1, fan_out), jnp.float32, -bound, bound)
        return w.astype(jnp.bfloat16), b  # bf16 weights, f32 biases

    k1, k2, k3 = jax.random.split(key, 3)
    w1, b1 = linear(k1, state_dim, hidden_dim)
    w2, b2 = linear(k2, hidden_dim, hidden_dim)
    w3, b3 = linear(k3, hidden_dim, action_dim)
    return {"w1": w1, "b1": b1, "w2": w2, "b2": b2, "w3": w3, "b3": b3}


def reference_forward(x, p):
    """f32 reference mirroring the kernel's bf16-storage / f32-accumulate path."""
    f32 = jnp.float32
    xb = x.astype(jnp.bfloat16).astype(f32)
    h = jnp.maximum(xb @ p["w1"].astype(f32) + p["b1"], 0.0)
    h = h.astype(jnp.bfloat16).astype(f32)
    h = jnp.maximum(h @ p["w2"].astype(f32) + p["b2"], 0.0)
    h = h.astype(jnp.bfloat16).astype(f32)
    return h @ p["w3"].astype(f32) + p["b3"]


if __name__ == "__main__":
    key = jax.random.PRNGKey(0)
    kx, kp = jax.random.split(key)

    batch = 8
    state_dim = 16
    action_dim = 4
    hidden_dim = 128

    x = jax.random.normal(kx, (batch, state_dim), dtype=jnp.float32)
    params = init_params(kp, state_dim, action_dim, hidden_dim)

    fwd = jax.jit(qnetwork_forward)
    out = jax.block_until_ready(fwd(x, params))

    ref = reference_forward(x, params)
    assert out.shape == (batch, action_dim), out.shape
    assert jnp.allclose(out, ref, atol=1e-2, rtol=1e-2), jnp.abs(out - ref).max()

    # Also exercise a larger batch (multi-step grid / ragged tail path).
    xb = jax.random.normal(kx, (1000, state_dim), dtype=jnp.float32)
    ob = jax.block_until_ready(fwd(xb, params))
    rb = reference_forward(xb, params)
    assert ob.shape == (1000, action_dim), ob.shape
    assert jnp.allclose(ob, rb, atol=1e-2, rtol=1e-2), jnp.abs(ob - rb).max()

    print("KERNEL_OK")
</pallas_src>

<mosaic_0001>
module attributes {stable_mosaic.version = 11 : i64} {
  func.func @qnet_kernel(%arg0: i32, %arg1: memref<16x16xf32, #tpu.memory_space<vmem>>, %arg2: memref<16x128xbf16, #tpu.memory_space<vmem>>, %arg3: memref<1x128xf32, #tpu.memory_space<vmem>>, %arg4: memref<128x128xbf16, #tpu.memory_space<vmem>>, %arg5: memref<1x128xf32, #tpu.memory_space<vmem>>, %arg6: memref<128x4xbf16, #tpu.memory_space<vmem>>, %arg7: memref<1x4xf32, #tpu.memory_space<vmem>>, %arg8: memref<16x4xf32, #tpu.memory_space<vmem>>) attributes {dimension_semantics = [#tpu.dimension_semantics<parallel>], iteration_bounds = array<i64: 1>, scalar_prefetch = 0 : i64, scratch_operands = 0 : i64, tpu.core_type = #tpu.core_type<tc>, window_params = [{transform_indices = @transform_0, window_bounds = array<i64: 16, 16>}, {pipeline_mode = #tpu.pipeline_mode<synchronous>, transform_indices = @transform_1, window_bounds = array<i64: 16, 128>}, {pipeline_mode = #tpu.pipeline_mode<synchronous>, transform_indices = @transform_2, window_bounds = array<i64: 1, 128>}, {pipeline_mode = #tpu.pipeline_mode<synchronous>, transform_indices = @transform_3, window_bounds = array<i64: 128, 128>}, {pipeline_mode = #tpu.pipeline_mode<synchronous>, transform_indices = @transform_4, window_bounds = array<i64: 1, 128>}, {pipeline_mode = #tpu.pipeline_mode<synchronous>, transform_indices = @transform_5, window_bounds = array<i64: 128, 4>}, {pipeline_mode = #tpu.pipeline_mode<synchronous>, transform_indices = @transform_6, window_bounds = array<i64: 1, 4>}, {transform_indices = @transform_7, window_bounds = array<i64: 16, 4>}]} {
    %c0 = arith.constant 0 : index
    %c0_0 = arith.constant 0 : index
    %0 = vector.load %arg1[%c0, %c0_0] : memref<16x16xf32, #tpu.memory_space<vmem>>, vector<16x16xf32>
    %1 = arith.truncf %0 : vector<16x16xf32> to vector<16x16xbf16>
    %c0_1 = arith.constant 0 : index
    %c0_2 = arith.constant 0 : index
    %2 = vector.load %arg2[%c0_1, %c0_2] : memref<16x128xbf16, #tpu.memory_space<vmem>>, vector<16x128xbf16>
    %cst = arith.constant dense<0.000000e+00> : vector<16x128xf32>
    %3 = tpu.matmul %1, %2, %cst {dimension_numbers = #tpu.dot_dimension_numbers<[1], [0], [0], [1], [0, 0, 1, 1], [], []>} : vector<16x16xbf16>, vector<16x128xbf16>, vector<16x128xf32> -> vector<16x128xf32>
    %c0_3 = arith.constant 0 : index
    %c0_4 = arith.constant 0 : index
    %4 = vector.load %arg3[%c0_3, %c0_4] : memref<1x128xf32, #tpu.memory_space<vmem>>, vector<1x128xf32>
    %5 = vector.broadcast %4 : vector<1x128xf32> to vector<16x128xf32>
    %6 = arith.addf %3, %5 : vector<16x128xf32>
    %cst_5 = arith.constant 0.000000e+00 : f32
    %7 = vector.broadcast %cst_5 : f32 to vector<16x128xf32>
    %8 = arith.maximumf %6, %7 : vector<16x128xf32>
    %9 = arith.truncf %8 : vector<16x128xf32> to vector<16x128xbf16>
    %c0_6 = arith.constant 0 : index
    %c0_7 = arith.constant 0 : index
    %10 = vector.load %arg4[%c0_6, %c0_7] : memref<128x128xbf16, #tpu.memory_space<vmem>>, vector<128x128xbf16>
    %cst_8 = arith.constant dense<0.000000e+00> : vector<16x128xf32>
    %11 = tpu.matmul %9, %10, %cst_8 {dimension_numbers = #tpu.dot_dimension_numbers<[1], [0], [0], [1], [0, 0, 1, 1], [], []>} : vector<16x128xbf16>, vector<128x128xbf16>, vector<16x128xf32> -> vector<16x128xf32>
    %c0_9 = arith.constant 0 : index
    %c0_10 = arith.constant 0 : index
    %12 = vector.load %arg5[%c0_9, %c0_10] : memref<1x128xf32, #tpu.memory_space<vmem>>, vector<1x128xf32>
    %13 = vector.broadcast %12 : vector<1x128xf32> to vector<16x128xf32>
    %14 = arith.addf %11, %13 : vector<16x128xf32>
    %cst_11 = arith.constant 0.000000e+00 : f32
    %15 = vector.broadcast %cst_11 : f32 to vector<16x128xf32>
    %16 = arith.maximumf %14, %15 : vector<16x128xf32>
    %17 = arith.truncf %16 : vector<16x128xf32> to vector<16x128xbf16>
    %c0_12 = arith.constant 0 : index
    %c0_13 = arith.constant 0 : index
    %18 = vector.load %arg6[%c0_12, %c0_13] : memref<128x4xbf16, #tpu.memory_space<vmem>>, vector<128x4xbf16>
    %cst_14 = arith.constant dense<0.000000e+00> : vector<16x4xf32>
    %19 = tpu.matmul %17, %18, %cst_14 {dimension_numbers = #tpu.dot_dimension_numbers<[1], [0], [0], [1], [0, 0, 1, 1], [], []>} : vector<16x128xbf16>, vector<128x4xbf16>, vector<16x4xf32> -> vector<16x4xf32>
    %c0_15 = arith.constant 0 : index
    %c0_16 = arith.constant 0 : index
    %20 = vector.load %arg7[%c0_15, %c0_16] : memref<1x4xf32, #tpu.memory_space<vmem>>, vector<1x4xf32>
    %21 = vector.broadcast %20 : vector<1x4xf32> to vector<16x4xf32>
    %22 = arith.addf %19, %21 : vector<16x4xf32>
    %c0_17 = arith.constant 0 : index
    %c0_18 = arith.constant 0 : index
    %23 = vector.load %arg8[%c0_17, %c0_18] : memref<16x4xf32, #tpu.memory_space<vmem>>, vector<16x4xf32>
    tpu.vector_store %arg8[%c0_17, %c0_18], %22 {strides = array<i32>} : memref<16x4xf32, #tpu.memory_space<vmem>>, vector<16x4xf32>,
    return
  }
  func.func @transform_0(%arg0: i32) -> (i32, i32) {
    %c0_i32 = arith.constant 0 : i32
    %c0_i32_0 = arith.constant 0 : i32
    return %arg0, %c0_i32 : i32, i32
  }
  func.func @transform_1(%arg0: i32) -> (i32, i32) {
    %c0_i32 = arith.constant 0 : i32
    %c0_i32_0 = arith.constant 0 : i32
    %c0_i32_1 = arith.constant 0 : i32
    return %c0_i32, %c0_i32_0 : i32, i32
  }
  func.func @transform_2(%arg0: i32) -> (i32, i32) {
    %c0_i32 = arith.constant 0 : i32
    %c0_i32_0 = arith.constant 0 : i32
    %c0_i32_1 = arith.constant 0 : i32
    return %c0_i32, %c0_i32_0 : i32, i32
  }
  func.func @transform_3(%arg0: i32) -> (i32, i32) {
    %c0_i32 = arith.constant 0 : i32
    %c0_i32_0 = arith.constant 0 : i32
    %c0_i32_1 = arith.constant 0 : i32
    return %c0_i32, %c0_i32_0 : i32, i32
  }
  func.func @transform_4(%arg0: i32) -> (i32, i32) {
    %c0_i32 = arith.constant 0 : i32
    %c0_i32_0 = arith.constant 0 : i32
    %c0_i32_1 = arith.constant 0 : i32
    return %c0_i32, %c0_i32_0 : i32, i32
  }
  func.func @transform_5(%arg0: i32) -> (i32, i32) {
    %c0_i32 = arith.constant 0 : i32
    %c0_i32_0 = arith.constant 0 : i32
    %c0_i32_1 = arith.constant 0 : i32
    return %c0_i32, %c0_i32_0 : i32, i32
  }
  func.func @transform_6(%arg0: i32) -> (i32, i32) {
    %c0_i32 = arith.constant 0 : i32
    %c0_i32_0 = arith.constant 0 : i32
    %c0_i32_1 = arith.constant 0 : i32
    return %c0_i32, %c0_i32_0 : i32, i32
  }
  func.func @transform_7(%arg0: i32) -> (i32, i32) {
    %c0_i32 = arith.constant 0 : i32
    %c0_i32_0 = arith.constant 0 : i32
    return %arg0, %c0_i32 : i32, i32
  }
}

</mosaic_0001>

<bundles_post_ra>
// kernel: qnetwork_forward.1
= control target key start
LH: loop header
LB: loop body
LE: loop exit
PB: predicated region body
PF: predicated region fallthrough
CT: control target
= control target key end

     0   :  { %12 = vsyncpa [#allocation3], 0  ;;  %s567_s0 = inlined_call_operand.hbm [shape: f32[8,16], index: 0, kind: input, shape index: {}]   ;;  %s568_s1 = inlined_call_operand.hbm [shape: bf16[16,128], index: 1, kind: input, shape index: {}]   ;;  %s569_s2 = inlined_call_operand.vmem [shape: f32[1,128], index: 2, kind: input, shape index: {}]   ;;  %s570_s3 = inlined_call_operand.vmem [shape: bf16[128,128], index: 3, kind: input, shape index: {}]   ;;  %s571_s4 = inlined_call_operand.vmem [shape: f32[1,128], index: 4, kind: input, shape index: {}]   ;;  %s572_s5 = inlined_call_operand.vmem [shape: bf16[128,4], index: 5, kind: input, shape index: {}]   ;;  %s573_s6 = inlined_call_operand.vmem [shape: f32[1,4], index: 6, kind: input, shape index: {}]   ;;  %s574_s7 = inlined_call_operand.vmem [shape: f32[8,4], index: 7, kind: output, shape index: {}]  }
   0x1   :  { %13 = vsyncpa [#allocation5], 0 }
   0x2   :  { %17 = vsyncadd [#allocation3], 128  ;;  %s18_s26 = sshll.u32 %s567_s0, 4  ;;  %s455_s27 = smov [#allocation2]   ;;  %s19_s26 = int_to_ptr.hbm [resolvable:$true] %s18_s26 }
   0x3   :  { %s20_s28 = sshll.u32 %s455_s27, 4  ;;  %s31_s8 = sshll.u32 %s568_s1, 4  ;;  %s21_s28 = int_to_ptr.vmem [resolvable:$true] %s20_s28  ;;  %s32_s8 = int_to_ptr.hbm [resolvable:$true] %s31_s8 }
   0x4   :  { %s456_s9 = smov 128   ;;  %s457_s10 = smov 8  }
   0x5   :  { %26 = dma.hbm_to_vmem [thread:$0]  %s19_s26, 128, %s21_s28, [#allocation3], %s456_s9, %s456_s9, %s457_s10  }
   0x6   :  { %s458_s11 = smov [#allocation4]   ;;  %s459_s13 = smov 64  }
   0x7   :  { %s33_s12 = sshll.u32 %s458_s11, 4  ;;  %s460_s14 = smov 4   ;;  %s34_s12 = int_to_ptr.vmem [resolvable:$true] %s33_s12 }
   0x8   :  { %39 = dma.hbm_to_vmem [thread:$0]  %s32_s8, 128, %s34_s12, [#allocation5], %s459_s13, %s459_s13, %s460_s14  }
   0x9   :  { %451 = dma.done.wait [#allocation3], 256  }
   0xa   :  { %452 = vsyncadd [#allocation3], 4294967040 }
   0xb   :  { %453 = dma.done.wait [#allocation5], 128  }
   0xc   :  { %454 = vsyncadd [#allocation5], 4294967168  ;;  %v377_v0 = vld [vmem:[#allocation4] sm:$0xff]  ;;  %v59_v1 = vld [vmem:[#allocation2] sm:$0xff]  ;;  %vm74_vm0 = vcmask 130048   ;;  %vm262_vm1 = vcmask 31744  }
   0xd   :  { %v60_v2 = vld [vmem:[#allocation2 + $0x8] sm:$0xff]  ;;  %v385_v4 = vld [vmem:[%s570_s3 + $0x38] sm:$0xff]  ;;  %85 = vmatpush.bf16.msra.mxu0 %v377_v0  ;;  %v384_v5 = vld [vmem:[%s570_s3 + $0x30] sm:$0xff] }
   0xe   :  { %v61_v3 = vpack.c.bf16 %v60_v2, %v59_v1  ;;  %163 = vmatpush.bf16.msra.mxu1 %v385_v4  ;;  %v383_v6 = vld [vmem:[%s570_s3 + $0x28] sm:$0xff]  ;;  %v382_v7 = vld [vmem:[%s570_s3 + $0x20] sm:$0xff]  ;;  %v381_v8 = vld [vmem:[%s570_s3 + $0x18] sm:$0xff] }
   0xf   :  { %v380_v9 = vld [vmem:[%s570_s3 + $0x10] sm:$0xff]  ;;  %v379_v10 = vld [vmem:[%s570_s3 + $0x8] sm:$0xff]  ;;  %v378_v11 = vld [vmem:[%s570_s3] sm:$0xff] }
  0x10   :  { %312 = vmatmul.msk.bf16.vlgmr.msra.gmra.mxu0 %vm74_vm0, %v61_v3  ;;  %v393_v12 = vld [vmem:[%s572_s5 + $0x38] sm:$0xff]  ;;  %v392_v13 = vld [vmem:[%s572_s5 + $0x30] sm:$0xff]  ;;  %v391_v14 = vld [vmem:[%s572_s5 + $0x28] sm:$0xff] }
  0x11   :  { %248 = vmatpush.bf16.msra.mxu2 %v393_v12  ;;  %v390_v15 = vld [vmem:[%s572_s5 + $0x20] sm:$0xff]  ;;  %v389_v24 = vld [vmem:[%s572_s5 + $0x18] sm:$0xff]  ;;  %v388_v25 = vld [vmem:[%s572_s5 + $0x10] sm:$0xff] }
  0x12   :  { %164 = vmatpush.bf16.msra.mxu1 %v384_v5  ;;  %v400_v17 = vld [vmem:[%s569_s2] ss:$0 sm:$0xff]  ;;  %v387_v26 = vld [vmem:[%s572_s5 + $0x8] sm:$0xff] }
  0x13   :  { %v386_v27 = vld [vmem:[%s572_s5] sm:$0xff] }
  0x14   :  { %v401_v29 = vld [vmem:[%s571_s4] ss:$0 sm:$0xff] }
  0x15   :  { %249 = vmatpush.bf16.msra.mxu2 %v392_v13  ;;  %v402_v36 = vld [vmem:[%s573_s6] ss:$0 sm:$0xff] }
  0x16   :  { %165 = vmatpush.bf16.msra.mxu1 %v383_v6 }
  0x19   :  { %250 = vmatpush.bf16.msra.mxu2 %v391_v14 }
  0x1a   :  { %166 = vmatpush.bf16.msra.mxu1 %v382_v7 }
  0x1d   :  { %251 = vmatpush.bf16.msra.mxu2 %v390_v15 }
  0x1e   :  { %167 = vmatpush.bf16.msra.mxu1 %v381_v8 }
  0x21   :  { %252 = vmatpush.bf16.msra.mxu2 %v389_v24 }
  0x22   :  { %168 = vmatpush.bf16.msra.mxu1 %v380_v9 }
  0x25   :  { %253 = vmatpush.bf16.msra.mxu2 %v388_v25 }
  0x26   :  { %169 = vmatpush.bf16.msra.mxu1 %v379_v10 }
  0x29   :  { %254 = vmatpush.bf16.msra.mxu2 %v387_v26 }
  0x2a   :  { %170 = vmatpush.bf16.msra.mxu1 %v378_v11 }
  0x2d   :  { %255 = vmatpush.bf16.msra.mxu2 %v386_v27 }
  0x8d   :  { %v87_v16 = vpop.f32.mrf.mxu0 }
  0x8e   :  { %v88_v18 = vadd.f32 %v400_v17, %v87_v16 }
  0x90   :  { %v92_v21 = vmax.f32 %v88_v18, 0.0 }
  0x95   :  { %v89_v19 = vpop.f32.mrf.mxu0 }
  0x96   :  { %v90_v20 = vadd.f32 %v400_v17, %v89_v19 }
  0x98   :  { %v93_v22 = vmax.f32 %v90_v20, 0.0 }
  0x9a   :  { %v94_v23 = vpack.c.bf16 %v93_v22, %v92_v21 }
  0x9c   :  { %171 = vmatmul.bf16.vlgmr.msra.gmra.mxu1 %v94_v23 }
 0x119   :  { %v172_v28 = vpop.f32.mrf.mxu1 }
 0x11a   :  { %v173_v30 = vadd.f32 %v401_v29, %v172_v28 }
 0x11c   :  { %v177_v33 = vmax.f32 %v173_v30, 0.0 }
 0x121   :  { %v174_v31 = vpop.f32.mrf.mxu1 }
 0x122   :  { %v175_v32 = vadd.f32 %v401_v29, %v174_v31 }
 0x124   :  { %v178_v34 = vmax.f32 %v175_v32, 0.0 }
 0x126   :  { %v179_v35 = vpack.c.bf16 %v178_v34, %v177_v33 }
 0x128   :  { %256 = vmatmul.bf16.vlgmr.msra.gmra.mxu2 %v179_v35 }
 0x1ab   :  { %v257_v37 = vpop.f32.mrf.mxu2 }
 0x1ac   :  { %v258_v38 = vadd.f32 %v402_v36, %v257_v37 }
 0x1ae   :  { %263 = vst.msk [vmem:[#allocation6] sm:$0xff] %vm262_vm1, %v258_v38 }
 0x1b3   :  { %v259_v39 = vpop.f32.mrf.mxu2 }
 0x1b5   :  { %v295_v40 = vld [vmem:[#allocation6] sm:$0xff] }
 0x1b6   :  { %296 = vst [vmem:[%s574_s7] sm:$0xff] %v295_v40 }
 0x1b7   :  { %302 = vsyncpa [#allocation3], 1 }
 0x1b8   :  { %303 = vsyncpa [#allocation5], 1 }

</bundles_post_ra>
